<compile_context>
chip_gen: v7x
topology: tpu7x:2x2x1
jax: 0.10.0
libtpu: 0.0.40
codegen_flags: <defaults>
</compile_context>

<pallas_src>
import functools

import jax
import jax.numpy as jnp
from jax.experimental import pallas as pl
from jax.experimental.pallas import tpu as pltpu

_LANE = 128  # vreg lane width


# ---------------------------------------------------------------------------
# Kernel
# ---------------------------------------------------------------------------
def _mlp_kernel(xT_ref, w1_ref, b1_ref, w2_ref, b2_ref, w3_ref, b3_ref, o_ref,
                *, bf16_tanh: bool):
    """Fused forward pass, batch on lanes.

    xT_ref: [4, TB]   w1: [16, 4]  b1: [16, 1]
                      w2: [8, 16]  b2: [8, 1]
                      w3: [1, 8]   b3: [1, 1]
    o_ref : [1, TB]
    """
    def act(z):
        if bf16_tanh:
            # EUP optimization for v6e/v7x: tanh in bf16, accumulation stays f32.
            return jnp.tanh(z.astype(jnp.bfloat16)).astype(jnp.float32)
        return jnp.tanh(z)

    x = xT_ref[...]                                                    # [4, TB]
    h1 = act(
        jnp.dot(w1_ref[...], x, preferred_element_type=jnp.float32)
        + b1_ref[...]
    )                                                                  # [16, TB]
    h2 = act(
        jnp.dot(w2_ref[...], h1, preferred_element_type=jnp.float32)
        + b2_ref[...]
    )                                                                  # [8, TB]
    o_ref[...] = (
        jnp.dot(w3_ref[...], h2, preferred_element_type=jnp.float32)
        + b3_ref[...]
    )                                                                  # [1, TB]


# ---------------------------------------------------------------------------
# Tiling / chip heuristics
# ---------------------------------------------------------------------------
def _infer_num_tensorcores():
    """v7x (and megacore v4/v5p) expose 2 TensorCores to one Pallas grid;
    v5e/v6e have a single TC, where the grid is just a serial loop."""
    try:
        kind = jax.devices()[0].device_kind.lower()
    except Exception:  # pragma: no cover - odd environments
        return 1
    if "v7" in kind or "7x" in kind or "v4" in kind or "v5p" in kind:
        return 2
    return 1


def _choose_tile(b_pad, max_tile_b, num_cores):
    """Pick a lane-multiple batch tile.

    Single-core chips (v5e/v6e): biggest tile that fits (fewest grid steps).
    Multi-core chips (v7x): keep >= 2*num_cores steps when the batch allows,
    so dimension_semantics=("parallel",) can feed every TensorCore.
    """
    max_tile_b = max(_LANE, (max_tile_b // _LANE) * _LANE)
    tile = min(max_tile_b, b_pad)
    if num_cores > 1:
        min_steps = 2 * num_cores
        if b_pad >= min_steps * _LANE:
            tile = min(tile, max(_LANE, (b_pad // min_steps) // _LANE * _LANE))
        elif b_pad >= 2 * _LANE:
            tile = min(tile, max(_LANE, (b_pad // 2) // _LANE * _LANE))
    return tile


def _vmem_limit_bytes(tile_b):
    """Scoped-VMEM request sized from the tile.

    Per row: x block 2*32 B (double-buffered, sublane-padded 4->8),
    out block 2*32 B (padded 1->8), h1 64 B, h2 32 B  => ~224 B/row.
    """
    need = 224 * tile_b + (2 << 20)
    return int(min(max(32 << 20, 2 * need), 64 << 20))


# ---------------------------------------------------------------------------
# Parameter prep (hoisted one-time layout work)
# ---------------------------------------------------------------------------
def prepare_params(params):
    """Keep torch-layout weights [out, in]; biases as column vectors."""
    return {
        "w1": params["w1"].astype(jnp.float32),           # [16, 4]
        "w2": params["w2"].astype(jnp.float32),           # [8, 16]
        "w3": params["w3"].astype(jnp.float32),           # [1, 8]
        "b1": params["b1"].astype(jnp.float32)[:, None],  # [16, 1]
        "b2": params["b2"].astype(jnp.float32)[:, None],  # [8, 1]
        "b3": params["b3"].astype(jnp.float32)[:, None],  # [1, 1]
    }


# ---------------------------------------------------------------------------
# Forward
# ---------------------------------------------------------------------------
def _forward_from_xt(xT, prepared, max_tile_b, bf16_tanh, num_cores):
    """xT: [4, B] float32 (feature-major).  Returns [B, 1]."""
    d_in, B = xT.shape
    assert d_in == 4

    if num_cores is None:
        num_cores = _infer_num_tensorcores()
    if xT.dtype != jnp.float32:
        xT = xT.astype(jnp.float32)

    # Pad batch (lane axis) to a lane multiple, then to a multiple of the tile.
    # NOTE: tile choice depends on b_pad, so distinct batch buckets retrace;
    # large batches are bucketed at tile granularity.  Perf churn only.
    b_pad = -(-B // _LANE) * _LANE
    tile_b = _choose_tile(b_pad, max_tile_b, num_cores)
    b_pad = -(-b_pad // tile_b) * tile_b
    if b_pad != B:  # Python-level check: pad fully elided when B is a multiple.
        xT = jnp.pad(xT, ((0, 0), (0, b_pad - B)))
    grid = (b_pad // tile_b,)

    kernel = functools.partial(_mlp_kernel, bf16_tanh=bf16_tanh)
    tilemap = lambda i: (0, i)
    fullmap = lambda i: (0, 0)

    out = pl.pallas_call(
        kernel,
        out_shape=jax.ShapeDtypeStruct((1, b_pad), jnp.float32),
        grid_spec=pltpu.PrefetchScalarGridSpec(
            num_scalar_prefetch=0,
            grid=grid,
            in_specs=[
                pl.BlockSpec((4, tile_b), tilemap),   # x tile (batch on lanes)
                pl.BlockSpec((16, 4), fullmap),       # w1 (resident)
                pl.BlockSpec((16, 1), fullmap),       # b1
                pl.BlockSpec((8, 16), fullmap),       # w2
                pl.BlockSpec((8, 1), fullmap),        # b2
                pl.BlockSpec((1, 8), fullmap),        # w3
                pl.BlockSpec((1, 1), fullmap),        # b3
            ],
            out_specs=pl.BlockSpec((1, tile_b), tilemap),  # lane-dense output
        ),
        compiler_params=pltpu.CompilerParams(
            dimension_semantics=("parallel",),
            vmem_limit_bytes=_vmem_limit_bytes(tile_b),
        ),
    )(xT, prepared["w1"], prepared["b1"], prepared["w2"], prepared["b2"],
      prepared["w3"], prepared["b3"])

    # Padded lanes are computed (bias-only garbage) and discarded here.
    return out[0, :B][:, None]                                          # [B, 1]


@functools.partial(jax.jit, static_argnames=("max_tile_b", "bf16_tanh", "num_cores"))
def intrinsic_reward_forward_xt(xT, prepared, max_tile_b=32768,
                                bf16_tanh=False, num_cores=None):
    """Preferred fast path: xT is [4, B] (feature-major).  Returns [B, 1].

    Producers should emit this layout directly so no standalone HBM
    transpose pass runs before the pallas_call.
    """
    return _forward_from_xt(xT, prepared, max_tile_b, bf16_tanh, num_cores)


@functools.partial(jax.jit, static_argnames=("max_tile_b", "bf16_tanh", "num_cores"))
def intrinsic_reward_forward(x, prepared, max_tile_b=32768,
                             bf16_tanh=False, num_cores=None):
    """Torch-layout compatibility path: x is [B, 4].  Returns [B, 1].

    NOTE: this pays one extra HBM transpose pass (~32 B/row).  For large
    batches prefer intrinsic_reward_forward_xt with x already in [4, B].
    """
    return _forward_from_xt(jnp.transpose(x.astype(jnp.float32)),
                            prepared, max_tile_b, bf16_tanh, num_cores)


# ---------------------------------------------------------------------------
# Reference / init / test
# ---------------------------------------------------------------------------
def init_params(key):
    """Deterministic synthetic init with shapes matching the torch module."""
    k1, k2, k3, k4, k5, k6 = jax.random.split(key, 6)
    return {
        "w1": jax.random.normal(k1, (16, 4), jnp.float32) * 0.5,   # fc1.weight
        "b1": jax.random.normal(k2, (16,), jnp.float32) * 0.1,     # fc1.bias
        "w2": jax.random.normal(k3, (8, 16), jnp.float32) * 0.5,   # fc2.weight
        "b2": jax.random.normal(k4, (8,), jnp.float32) * 0.1,      # fc2.bias
        "w3": jax.random.normal(k5, (1, 8), jnp.float32) * 0.5,    # fc_loc.weight
        "b3": jax.random.normal(k6, (1,), jnp.float32) * 0.1,      # fc_loc.bias
    }


def reference_forward(x, p):
    h1 = jnp.tanh(x @ p["w1"].T + p["b1"])
    h2 = jnp.tanh(h1 @ p["w2"].T + p["b2"])
    return h2 @ p["w3"].T + p["b3"]


if __name__ == "__main__":
    key = jax.random.PRNGKey(0)
    kx1, kx2, kx3, kp = jax.random.split(key, 4)

    params = init_params(kp)
    prepared = prepare_params(params)

    # 1) Fast path: feature-major [4, B] input (no wrapper transpose pass).
    B1 = 16
    xT1 = jax.random.normal(kx1, (4, B1), jnp.float32)
    out1 = jax.block_until_ready(intrinsic_reward_forward_xt(xT1, prepared))
    ref1 = reference_forward(xT1.T, params)
    assert out1.shape == (B1, 1)
    assert jnp.allclose(out1, ref1, atol=1e-5, rtol=1e-5)

    # 2) Torch-layout [B, 4] compatibility path; non-lane-multiple batch
    #    exercises the padding / tail handling.
    B2 = 300
    x2 = jax.random.normal(kx2, (B2, 4), jnp.float32)
    out2 = jax.block_until_ready(intrinsic_reward_forward(x2, prepared))
    ref2 = reference_forward(x2, params)
    assert out2.shape == (B2, 1)
    assert jnp.allclose(out2, ref2, atol=1e-5, rtol=1e-5)

    # 3) Multi-step grid (small tile cap) to exercise the pipelined path.
    B3 = 1024
    xT3 = jax.random.normal(kx3, (4, B3), jnp.float32)
    out3 = jax.block_until_ready(
        intrinsic_reward_forward_xt(xT3, prepared, max_tile_b=256))
    ref3 = reference_forward(xT3.T, params)
    assert out3.shape == (B3, 1)
    assert jnp.allclose(out3, ref3, atol=1e-5, rtol=1e-5)

    # 4) Optional bf16-tanh path (v6e/v7x EUP optimization), looser tolerance.
    out4 = jax.block_until_ready(
        intrinsic_reward_forward_xt(xT3, prepared, bf16_tanh=True))
    assert jnp.allclose(out4, ref3, atol=1e-1, rtol=1e-1)

    print("KERNEL_OK")
</pallas_src>

<mosaic_0001>
module attributes {stable_mosaic.version = 11 : i64} {
  func.func @_mlp_kernel(%arg0: i32, %arg1: memref<4x128xf32, #tpu.memory_space<vmem>>, %arg2: memref<16x4xf32, #tpu.memory_space<vmem>>, %arg3: memref<16x1xf32, #tpu.memory_space<vmem>>, %arg4: memref<8x16xf32, #tpu.memory_space<vmem>>, %arg5: memref<8x1xf32, #tpu.memory_space<vmem>>, %arg6: memref<1x8xf32, #tpu.memory_space<vmem>>, %arg7: memref<1x1xf32, #tpu.memory_space<vmem>>, %arg8: memref<1x128xf32, #tpu.memory_space<vmem>>) attributes {dimension_semantics = [#tpu.dimension_semantics<parallel>], iteration_bounds = array<i64: 1>, scalar_prefetch = 0 : i64, scratch_operands = 0 : i64, tpu.core_type = #tpu.core_type<tc>, window_params = [{transform_indices = @transform_0, window_bounds = array<i64: 4, 128>}, {pipeline_mode = #tpu.pipeline_mode<synchronous>, transform_indices = @transform_1, window_bounds = array<i64: 16, 4>}, {pipeline_mode = #tpu.pipeline_mode<synchronous>, transform_indices = @transform_2, window_bounds = array<i64: 16, 1>}, {pipeline_mode = #tpu.pipeline_mode<synchronous>, transform_indices = @transform_3, window_bounds = array<i64: 8, 16>}, {pipeline_mode = #tpu.pipeline_mode<synchronous>, transform_indices = @transform_4, window_bounds = array<i64: 8, 1>}, {pipeline_mode = #tpu.pipeline_mode<synchronous>, transform_indices = @transform_5, window_bounds = array<i64: 1, 8>}, {pipeline_mode = #tpu.pipeline_mode<synchronous>, transform_indices = @transform_6, window_bounds = array<i64: 1, 1>}, {transform_indices = @transform_7, window_bounds = array<i64: 1, 128>}]} {
    %c0 = arith.constant 0 : index
    %c0_0 = arith.constant 0 : index
    %0 = vector.load %arg1[%c0, %c0_0] : memref<4x128xf32, #tpu.memory_space<vmem>>, vector<4x128xf32>
    %c0_1 = arith.constant 0 : index
    %c0_2 = arith.constant 0 : index
    %1 = vector.load %arg2[%c0_1, %c0_2] : memref<16x4xf32, #tpu.memory_space<vmem>>, vector<16x4xf32>
    %cst = arith.constant dense<0.000000e+00> : vector<16x128xf32>
    %2 = tpu.matmul %1, %0, %cst {dimension_numbers = #tpu.dot_dimension_numbers<[1], [0], [0], [1], [0, 0, 1, 1], [], []>} : vector<16x4xf32>, vector<4x128xf32>, vector<16x128xf32> -> vector<16x128xf32>
    %c0_3 = arith.constant 0 : index
    %c0_4 = arith.constant 0 : index
    %3 = vector.load %arg3[%c0_3, %c0_4] : memref<16x1xf32, #tpu.memory_space<vmem>>, vector<16x1xf32>
    %4 = vector.broadcast %3 : vector<16x1xf32> to vector<16x128xf32>
    %5 = arith.addf %2, %4 : vector<16x128xf32>
    %6 = math.tanh %5 : vector<16x128xf32>
    %c0_5 = arith.constant 0 : index
    %c0_6 = arith.constant 0 : index
    %7 = vector.load %arg4[%c0_5, %c0_6] : memref<8x16xf32, #tpu.memory_space<vmem>>, vector<8x16xf32>
    %cst_7 = arith.constant dense<0.000000e+00> : vector<8x128xf32>
    %8 = tpu.matmul %7, %6, %cst_7 {dimension_numbers = #tpu.dot_dimension_numbers<[1], [0], [0], [1], [0, 0, 1, 1], [], []>} : vector<8x16xf32>, vector<16x128xf32>, vector<8x128xf32> -> vector<8x128xf32>
    %c0_8 = arith.constant 0 : index
    %c0_9 = arith.constant 0 : index
    %9 = vector.load %arg5[%c0_8, %c0_9] : memref<8x1xf32, #tpu.memory_space<vmem>>, vector<8x1xf32>
    %10 = vector.broadcast %9 : vector<8x1xf32> to vector<8x128xf32>
    %11 = arith.addf %8, %10 : vector<8x128xf32>
    %12 = math.tanh %11 : vector<8x128xf32>
    %c0_10 = arith.constant 0 : index
    %c0_11 = arith.constant 0 : index
    %13 = vector.load %arg6[%c0_10, %c0_11] : memref<1x8xf32, #tpu.memory_space<vmem>>, vector<1x8xf32>
    %cst_12 = arith.constant dense<0.000000e+00> : vector<1x128xf32>
    %14 = tpu.matmul %13, %12, %cst_12 {dimension_numbers = #tpu.dot_dimension_numbers<[1], [0], [0], [1], [0, 0, 1, 1], [], []>} : vector<1x8xf32>, vector<8x128xf32>, vector<1x128xf32> -> vector<1x128xf32>
    %c0_13 = arith.constant 0 : index
    %c0_14 = arith.constant 0 : index
    %15 = vector.load %arg7[%c0_13, %c0_14] : memref<1x1xf32, #tpu.memory_space<vmem>>, vector<1x1xf32>
    %16 = vector.broadcast %15 : vector<1x1xf32> to vector<1x128xf32>
    %17 = arith.addf %14, %16 : vector<1x128xf32>
    %c0_15 = arith.constant 0 : index
    %c0_16 = arith.constant 0 : index
    %18 = vector.load %arg8[%c0_15, %c0_16] : memref<1x128xf32, #tpu.memory_space<vmem>>, vector<1x128xf32>
    tpu.vector_store %arg8[%c0_15, %c0_16], %17 {strides = array<i32>} : memref<1x128xf32, #tpu.memory_space<vmem>>, vector<1x128xf32>,
    return
  }
  func.func @transform_0(%arg0: i32) -> (i32, i32) {
    %c0_i32 = arith.constant 0 : i32
    %c0_i32_0 = arith.constant 0 : i32
    return %c0_i32, %arg0 : i32, i32
  }
  func.func @transform_1(%arg0: i32) -> (i32, i32) {
    %c0_i32 = arith.constant 0 : i32
    %c0_i32_0 = arith.constant 0 : i32
    %c0_i32_1 = arith.constant 0 : i32
    return %c0_i32, %c0_i32_0 : i32, i32
  }
  func.func @transform_2(%arg0: i32) -> (i32, i32) {
    %c0_i32 = arith.constant 0 : i32
    %c0_i32_0 = arith.constant 0 : i32
    %c0_i32_1 = arith.constant 0 : i32
    return %c0_i32, %c0_i32_0 : i32, i32
  }
  func.func @transform_3(%arg0: i32) -> (i32, i32) {
    %c0_i32 = arith.constant 0 : i32
    %c0_i32_0 = arith.constant 0 : i32
    %c0_i32_1 = arith.constant 0 : i32
    return %c0_i32, %c0_i32_0 : i32, i32
  }
  func.func @transform_4(%arg0: i32) -> (i32, i32) {
    %c0_i32 = arith.constant 0 : i32
    %c0_i32_0 = arith.constant 0 : i32
    %c0_i32_1 = arith.constant 0 : i32
    return %c0_i32, %c0_i32_0 : i32, i32
  }
  func.func @transform_5(%arg0: i32) -> (i32, i32) {
    %c0_i32 = arith.constant 0 : i32
    %c0_i32_0 = arith.constant 0 : i32
    %c0_i32_1 = arith.constant 0 : i32
    return %c0_i32, %c0_i32_0 : i32, i32
  }
  func.func @transform_6(%arg0: i32) -> (i32, i32) {
    %c0_i32 = arith.constant 0 : i32
    %c0_i32_0 = arith.constant 0 : i32
    %c0_i32_1 = arith.constant 0 : i32
    return %c0_i32, %c0_i32_0 : i32, i32
  }
  func.func @transform_7(%arg0: i32) -> (i32, i32) {
    %c0_i32 = arith.constant 0 : i32
    %c0_i32_0 = arith.constant 0 : i32
    return %c0_i32, %arg0 : i32, i32
  }
}

</mosaic_0001>

<bundles_post_ra>
// kernel: intrinsic_reward_forward_xt.1
= control target key start
LH: loop header
LB: loop body
LE: loop exit
PB: predicated region body
PF: predicated region fallthrough
CT: control target
= control target key end

     0   :  { %vm50_vm0 = vcmask 1043456   ;;  %vm43_vm1 = vcmask 31744   ;;  %v348_v3 = vmov 0   ;;  %v349_v6 = vmov 0.0|0.0   ;;  %s422_s0 = inlined_call_operand.vmem [shape: f32[4,128], index: 0, kind: input, shape index: {}]   ;;  %s423_s1 = inlined_call_operand.vmem [shape: f32[16,4], index: 1, kind: input, shape index: {}]   ;;  %s424_s2 = inlined_call_operand.vmem [shape: f32[16,1], index: 2, kind: input, shape index: {}]   ;;  %s425_s4 = inlined_call_operand.vmem [shape: f32[8,1], index: 4, kind: input, shape index: {}]   ;;  %s426_s6 = inlined_call_operand.<no memory space> [shape: f32[1,1], index: 6, kind: input, shape index: {}]   ;;  %s427_s3 = inlined_call_operand.vmem [shape: f32[8,16], index: 3, kind: input, shape index: {}]   ;;  %s428_s5 = inlined_call_operand.vmem [shape: f32[1,8], index: 5, kind: input, shape index: {}]   ;;  %s429_s7 = inlined_call_operand.vmem [shape: f32[1,128], index: 7, kind: output, shape index: {}]  }
   0x1   :  { %v28_v0 = vld [vmem:[%s422_s0] sm:$0xf]  ;;  %v30_v2 = vld [vmem:[%s423_s1 + $0x8] sm:$0xff]  ;;  %340 = vset.pattern.permute.xlu0 %v348_v3  ;;  %341 = vset.pattern.permute.xlu1 %v348_v3  ;;  %vm350_vm2 = vmmov 0   ;;  %v351_v7 = vmov 0.0   ;;  %v12_v9 = vstv %s426_s6  ;;  %vm138_vm3 = vcmask 130048  }
   0x2   :  { %v29_v1 = vld [vmem:[%s423_s1] sm:$0xff]  ;;  %316 = vmatprep.subr.msk.mxu0 %vm50_vm0, %v28_v0  ;;  %v32_v5 = vld [vmem:[%s424_s2 + $0x8] sm:$0xff]  ;;  %333 = vmatprep.subr.bf16.mxu1 %v349_v6  ;;  %13 = vst [vmem:[#allocation2] sm:$0x1] %v12_v9  ;;  %vm224_vm4 = vcmask 64512   ;;  %v220_v27 = vlaneseq }
   0x3   :  { %318 = vmatprep.mubr.msk.f32.mxu0 %vm43_vm1, %v29_v1  ;;  %v31_v4 = vld [vmem:[%s424_s2] sm:$0xff]  ;;  %317 = vmatpush3.msk.msra.mxu0 %vm50_vm0, %v28_v0 }
   0x4   :  { %35 = vperm.xlu0 %340, %v31_v4   ;;  %319 = vmatmul.mubr.msk.f32.vlgmr.msra.gmra.mrb[0].mxu0 %vm43_vm1, %v30_v2  ;;  %v132_v8 = vld [vmem:[%s425_s4] sm:$0xff]  ;;  %v221_v28 = vshrl.u32 %v220_v27, 7 }
   0x5   :  { %325 = vmatprep.mubr.msk.f32.mxu1 %vm350_vm2, %v351_v7  ;;  %328 = vmatprep.subr.mxu0 %v351_v7  ;;  %v131_v20 = vld [vmem:[%s427_s3] sm:$0xff] }
   0x6   :  { %330 = vmatprep.mubr.msk.f32.mxu0 %vm350_vm2, %v351_v7  ;;  %135 = vperm.xlu1 %341, %v132_v8   ;;  %v213_v25 = vld [vmem:[%s428_s5] sm:$0x1]  ;;  %v222_v29 = vsub.s32 0, %v221_v28 }
   0x8   :  { %40 = vperm.xlu0 %340, %v32_v5  }
   0x9   :  { %v214_v10 = vld [vmem:[#allocation2] sm:$0x1] }
   0xa   :  { %217 = vperm.xlu1 %341, %v214_v10  }
  0x83   :  { %v36_v11 = vpop.permute.xlu0 %35 }
  0x85   :  { %v136_v21 = vpop.permute.xlu1 %135 }
  0x87   :  { %v41_v12 = vpop.permute.xlu0 %40 }
  0x89   :  { %v218_v30 = vpop.permute.xlu1 %217 }
  0x8a   :  { %v223_v31 = vrot.slane %v218_v30, %v222_v29 }
  0xd7   :  { %v320_v13 = vpop.f32.mrb[0].mxu0 }
  0xd8   :  { %v126_v14 = vadd.f32 %v320_v13, %v41_v12  ;;  %v120_v15 = vpop.f32.mrb[1].mxu0 }
  0xd9   :  { %v121_v16 = vadd.f32 %v120_v15, %v36_v11 }
  0xda   :  { %342 = vtanh.f32 %v126_v14 }
  0xdb   :  { %344 = vtanh.f32 %v121_v16 }
  0xe4   :  { %v343_v17 = vpop.eup %342 }
  0xe5   :  { %v345_v18 = vpop.eup %344 }
  0xe6   :  { %v334_v19 = vpack.c.bf16 %v343_v17, %v345_v18 }
  0xe8   :  { %335 = vmatpush3.bf16.msra.mxu1 %v334_v19 }
  0xeb   :  { %326 = vmatmul.mubr.msk.f32.vlgmr.msra.gmra.mrb[0].mxu1 %vm138_vm3, %v131_v20 }
 0x1be   :  { %v208_v22 = vpop.f32.mrb[0].mxu1 }
 0x1bf   :  { %v209_v23 = vadd.f32 %v208_v22, %v136_v21  ;;  %v327_v24 = vpop.f32.mrb[1].mxu1 }
 0x1c1   :  { %346 = vtanh.f32 %v209_v23 }
 0x1cb   :  { %v347_v26 = vpop.eup %346 }
 0x1cc   :  { %329 = vmatpush3.msra.mxu0 %v347_v26 }
 0x1cd   :  { %331 = vmatmul.mubr.msk.f32.vlgmr.msra.gmra.mrb[2].mxu0 %vm224_vm4, %v213_v25 }
 0x2a0   :  { %v294_v32 = vpop.f32.mrb[2].mxu0 }
 0x2a1   :  { %v295_v33 = vadd.f32 %v294_v32, %v223_v31  ;;  %v332_v34 = vpop.f32.mrb[3].mxu0 }
 0x2a3   :  { %298 = vst [vmem:[%s429_s7] sm:$0x1] %v295_v33 }

</bundles_post_ra>
